<compile_context>
chip_gen: v7x
topology: tpu7x:2x2x1
jax: 0.10.0
libtpu: 0.0.40
codegen_flags: <defaults>
</compile_context>

<pallas_src>
import functools

import jax
import jax.numpy as jnp
from jax.experimental import pallas as pl
from jax.experimental.pallas import tpu as pltpu


def _round_up(n, m):
    return ((n + m - 1) // m) * m


# ----------------------------- kernels --------------------------------------

def _fc1_fc2(x_ref, w1_ref, b1_ref, w2_ref, b2_ref):
    # fc1: (TB, K1p) @ (K1p, Dp) -> f32 accumulate on the MXU, f32 bias add.
    h = jnp.dot(x_ref[...], w1_ref[...], preferred_element_type=jnp.float32)
    h = h + b1_ref[...]
    # fc2: feed the MXU in the weight dtype (bf16 fast path), f32 accumulate.
    h = h.astype(w2_ref.dtype)
    out = jnp.dot(h, w2_ref[...], preferred_element_type=jnp.float32)
    return out + b2_ref[...]


def _logits_kernel(x_ref, w1_ref, b1_ref, w2_ref, b2_ref, o_ref):
    o_ref[...] = _fc1_fc2(x_ref, w1_ref, b1_ref, w2_ref, b2_ref).astype(o_ref.dtype)


def _argmax_kernel(num_classes, x_ref, w1_ref, b1_ref, w2_ref, b2_ref, o_ref):
    # eval path: F.softmax(out, -1).max(1)[1] == argmax(logits) (softmax monotone)
    logits = _fc1_fc2(x_ref, w1_ref, b1_ref, w2_ref, b2_ref)          # (TB, Cp) f32
    cp = logits.shape[-1]
    col = jax.lax.broadcasted_iota(jnp.int32, logits.shape, 1)
    neg = jnp.finfo(jnp.float32).min
    masked = jnp.where(col < num_classes, logits, neg)                # hide padded classes
    row_max = jnp.max(masked, axis=-1, keepdims=True)
    cand = jnp.where(masked == row_max, col, cp)                      # first index of max
    o_ref[...] = jnp.min(cand, axis=-1, keepdims=True).astype(jnp.int32)


# ----------------------------- wrappers --------------------------------------

def prepare_params(params, num_pkt, dim_model, num_classes,
                   compute_dtype=jnp.bfloat16):
    """Pad weights once to 128-lane-aligned shapes and cast matmul operands to
    the fast MXU dtype (bf16 default; f32 also supported). Biases stay f32."""
    K1 = num_pkt * dim_model
    K1p = _round_up(K1, 128)
    Dp = _round_up(dim_model, 128)
    Cp = _round_up(num_classes, 128)
    w1 = jnp.zeros((K1p, Dp), compute_dtype).at[:K1, :dim_model].set(
        params["w1"].astype(compute_dtype))
    b1 = jnp.zeros((1, Dp), jnp.float32).at[:, :dim_model].set(
        params["b1"].astype(jnp.float32))
    w2 = jnp.zeros((Dp, Cp), compute_dtype).at[:dim_model, :num_classes].set(
        params["w2"].astype(compute_dtype))
    b2 = jnp.zeros((1, Cp), jnp.float32).at[:, :num_classes].set(
        params["b2"].astype(jnp.float32))
    return {"w1": w1, "b1": b1, "w2": w2, "b2": b2,
            "num_classes": num_classes}


def classification_forward(x, pparams, *, training=True, block_b=256):
    """x: (batch, num_pkt, dim_model). Returns logits (training) or predicted
    class indices (eval), matching the PyTorch module."""
    w1, b1, w2, b2 = pparams["w1"], pparams["b1"], pparams["w2"], pparams["b2"]
    num_classes = pparams["num_classes"]
    K1p, Dp = w1.shape
    Cp = w2.shape[1]
    cdt = w1.dtype
    itemsize = jnp.dtype(cdt).itemsize

    B = x.shape[0]
    x_flat = x.reshape(B, -1)                       # x.view(x.size(0), -1)
    K1 = x_flat.shape[1]

    # Batch tile: >= 8 sublanes, <= block_b, and small enough that the
    # double-buffered activation tiles stay well inside VMEM (v7x: 64 MiB).
    act_budget = 24 << 20
    TB = min(block_b, max(8, _round_up(B, 8)))
    while TB > 8 and 2 * TB * K1p * itemsize + 2 * TB * Cp * 4 > act_budget:
        TB = max(8, TB // 2)
    Bp = _round_up(B, TB)

    x_pad = jnp.zeros((Bp, K1p), cdt).at[:B, :K1].set(x_flat.astype(cdt))

    weight_bytes = w1.size * itemsize + w2.size * itemsize + (b1.size + b2.size) * 4
    act_bytes = 2 * TB * K1p * itemsize + 2 * TB * Cp * 4
    vmem_limit = int(min(128 << 20, max(16 << 20, weight_bytes + act_bytes + (4 << 20))))
    # TODO(synk): if num_pkt*dim_model is so large that the resident w1 alone
    # nears ~48 MiB, add a K-tiled "arbitrary" reduction axis with a VMEM
    # accumulator instead of holding w1 fully resident (v7x has 64 MiB VMEM).

    grid = (Bp // TB,)
    in_specs = [
        pl.BlockSpec((TB, K1p), lambda i: (i, 0)),   # activations: streamed per batch block
        pl.BlockSpec((K1p, Dp), lambda i: (0, 0)),   # weights / biases: VMEM resident
        pl.BlockSpec((1, Dp), lambda i: (0, 0)),
        pl.BlockSpec((Dp, Cp), lambda i: (0, 0)),
        pl.BlockSpec((1, Cp), lambda i: (0, 0)),
    ]
    flops = 2 * Bp * (K1p * Dp + Dp * Cp)
    compiler_params = pltpu.CompilerParams(
        dimension_semantics=("parallel",),           # megacore-shard batch blocks on v7x
        vmem_limit_bytes=vmem_limit,
    )

    if training:
        out_bytes = Bp * Cp * 4
        logits = pl.pallas_call(
            _logits_kernel,
            out_shape=jax.ShapeDtypeStruct((Bp, Cp), jnp.float32),
            grid_spec=pltpu.PrefetchScalarGridSpec(
                num_scalar_prefetch=0, grid=grid,
                in_specs=in_specs,
                out_specs=pl.BlockSpec((TB, Cp), lambda i: (i, 0))),
            compiler_params=compiler_params,
            cost_estimate=pl.CostEstimate(
                flops=flops, transcendentals=0,
                bytes_accessed=x_pad.size * itemsize + weight_bytes + out_bytes),
        )(x_pad, w1, b1, w2, b2)
        return logits[:B, :num_classes]

    # eval: fused in-kernel argmax; only (B, 1) int32 is written to HBM.
    out_bytes = Bp * 4
    preds = pl.pallas_call(
        functools.partial(_argmax_kernel, num_classes),
        out_shape=jax.ShapeDtypeStruct((Bp, 1), jnp.int32),
        grid_spec=pltpu.PrefetchScalarGridSpec(
            num_scalar_prefetch=0, grid=grid,
            in_specs=in_specs,
            out_specs=pl.BlockSpec((TB, 1), lambda i: (i, 0))),
        compiler_params=compiler_params,
        cost_estimate=pl.CostEstimate(
            flops=flops, transcendentals=0,
            bytes_accessed=x_pad.size * itemsize + weight_bytes + out_bytes),
    )(x_pad, w1, b1, w2, b2)
    return preds[:B, 0]


def init_params(key, num_pkt, dim_model, num_classes):
    k1, k2, k3, k4 = jax.random.split(key, 4)
    in1 = num_pkt * dim_model
    s1 = 1.0 / jnp.sqrt(in1)
    s2 = 1.0 / jnp.sqrt(dim_model)
    return {
        "w1": jax.random.uniform(k1, (in1, dim_model), jnp.float32, -s1, s1),
        "b1": jax.random.uniform(k2, (dim_model,), jnp.float32, -s1, s1),
        "w2": jax.random.uniform(k3, (dim_model, num_classes), jnp.float32, -s2, s2),
        "b2": jax.random.uniform(k4, (num_classes,), jnp.float32, -s2, s2),
    }


if __name__ == "__main__":
    batch, num_pkt, dim_model, num_classes = 2, 8, 32, 10

    key = jax.random.PRNGKey(0)
    kx, kp, kx2 = jax.random.split(key, 3)
    x = jax.random.normal(kx, (batch, num_pkt, dim_model), jnp.float32)
    params = init_params(kp, num_pkt, dim_model, num_classes)

    # plain-JAX reference (matches the PyTorch module in f32)
    x_flat = x.reshape(batch, -1)
    ref = (x_flat @ params["w1"] + params["b1"]) @ params["w2"] + params["b2"]

    # ---- f32 path: exact check of both training and eval branches ----
    pp_f32 = prepare_params(params, num_pkt, dim_model, num_classes, jnp.float32)
    logits_f32 = classification_forward(x, pp_f32, training=True)
    jax.block_until_ready(logits_f32)
    assert jnp.allclose(logits_f32, ref, atol=1e-3, rtol=1e-3)

    preds_f32 = classification_forward(x, pp_f32, training=False)
    jax.block_until_ready(preds_f32)
    assert preds_f32.shape == (batch,)
    assert jnp.array_equal(preds_f32, jnp.argmax(ref, axis=-1))

    # ---- bf16 fast path (MXU bf16 on v5e/v6e/v7x): loose check ----
    pp_bf16 = prepare_params(params, num_pkt, dim_model, num_classes, jnp.bfloat16)
    logits_bf16 = classification_forward(x, pp_bf16, training=True)
    jax.block_until_ready(logits_bf16)
    ref_bf16 = ((x_flat.astype(jnp.bfloat16).astype(jnp.float32)
                 @ params["w1"].astype(jnp.bfloat16).astype(jnp.float32)
                 + params["b1"]).astype(jnp.bfloat16).astype(jnp.float32)
                @ params["w2"].astype(jnp.bfloat16).astype(jnp.float32)
                + params["b2"])
    assert jnp.allclose(logits_bf16, ref_bf16, atol=5e-2, rtol=5e-2)

    preds_bf16 = classification_forward(x, pp_bf16, training=False)
    jax.block_until_ready(preds_bf16)
    assert preds_bf16.shape == (batch,) and preds_bf16.dtype == jnp.int32

    # ---- multi-block batch grid (exercises the pipelined "parallel" grid) ----
    batch2 = 20
    x2 = jax.random.normal(kx2, (batch2, num_pkt, dim_model), jnp.float32)
    logits2 = classification_forward(x2, pp_f32, training=True, block_b=8)
    jax.block_until_ready(logits2)
    ref2 = (x2.reshape(batch2, -1) @ params["w1"] + params["b1"]) @ params["w2"] + params["b2"]
    assert jnp.allclose(logits2, ref2, atol=1e-3, rtol=1e-3)

    print("KERNEL_OK")
</pallas_src>

<mosaic_0001>
module attributes {stable_mosaic.version = 11 : i64} {
  func.func @_logits_kernel(%arg0: i32, %arg1: memref<8x256xf32, #tpu.memory_space<vmem>>, %arg2: memref<256x128xf32, #tpu.memory_space<vmem>>, %arg3: memref<1x128xf32, #tpu.memory_space<vmem>>, %arg4: memref<128x128xf32, #tpu.memory_space<vmem>>, %arg5: memref<1x128xf32, #tpu.memory_space<vmem>>, %arg6: memref<8x128xf32, #tpu.memory_space<vmem>>) attributes {dimension_semantics = [#tpu.dimension_semantics<parallel>], iteration_bounds = array<i64: 1>, scalar_prefetch = 0 : i64, scratch_operands = 0 : i64, tpu.core_type = #tpu.core_type<tc>, window_params = [{transform_indices = @transform_0, window_bounds = array<i64: 8, 256>}, {pipeline_mode = #tpu.pipeline_mode<synchronous>, transform_indices = @transform_1, window_bounds = array<i64: 256, 128>}, {pipeline_mode = #tpu.pipeline_mode<synchronous>, transform_indices = @transform_2, window_bounds = array<i64: 1, 128>}, {pipeline_mode = #tpu.pipeline_mode<synchronous>, transform_indices = @transform_3, window_bounds = array<i64: 128, 128>}, {pipeline_mode = #tpu.pipeline_mode<synchronous>, transform_indices = @transform_4, window_bounds = array<i64: 1, 128>}, {transform_indices = @transform_5, window_bounds = array<i64: 8, 128>}]} {
    %c0 = arith.constant 0 : index
    %c0_0 = arith.constant 0 : index
    %0 = vector.load %arg1[%c0, %c0_0] : memref<8x256xf32, #tpu.memory_space<vmem>>, vector<8x256xf32>
    %c0_1 = arith.constant 0 : index
    %c0_2 = arith.constant 0 : index
    %1 = vector.load %arg2[%c0_1, %c0_2] : memref<256x128xf32, #tpu.memory_space<vmem>>, vector<256x128xf32>
    %cst = arith.constant dense<0.000000e+00> : vector<8x128xf32>
    %2 = tpu.matmul %0, %1, %cst {dimension_numbers = #tpu.dot_dimension_numbers<[1], [0], [0], [1], [0, 0, 1, 1], [], []>} : vector<8x256xf32>, vector<256x128xf32>, vector<8x128xf32> -> vector<8x128xf32>
    %c0_3 = arith.constant 0 : index
    %c0_4 = arith.constant 0 : index
    %3 = vector.load %arg3[%c0_3, %c0_4] : memref<1x128xf32, #tpu.memory_space<vmem>>, vector<1x128xf32>
    %4 = vector.broadcast %3 : vector<1x128xf32> to vector<8x128xf32>
    %5 = arith.addf %2, %4 : vector<8x128xf32>
    %c0_5 = arith.constant 0 : index
    %c0_6 = arith.constant 0 : index
    %6 = vector.load %arg4[%c0_5, %c0_6] : memref<128x128xf32, #tpu.memory_space<vmem>>, vector<128x128xf32>
    %cst_7 = arith.constant dense<0.000000e+00> : vector<8x128xf32>
    %7 = tpu.matmul %5, %6, %cst_7 {dimension_numbers = #tpu.dot_dimension_numbers<[1], [0], [0], [1], [0, 0, 1, 1], [], []>} : vector<8x128xf32>, vector<128x128xf32>, vector<8x128xf32> -> vector<8x128xf32>
    %c0_8 = arith.constant 0 : index
    %c0_9 = arith.constant 0 : index
    %8 = vector.load %arg5[%c0_8, %c0_9] : memref<1x128xf32, #tpu.memory_space<vmem>>, vector<1x128xf32>
    %9 = vector.broadcast %8 : vector<1x128xf32> to vector<8x128xf32>
    %10 = arith.addf %7, %9 : vector<8x128xf32>
    %c0_10 = arith.constant 0 : index
    %c0_11 = arith.constant 0 : index
    %11 = vector.load %arg6[%c0_10, %c0_11] : memref<8x128xf32, #tpu.memory_space<vmem>>, vector<8x128xf32>
    tpu.vector_store %arg6[%c0_10, %c0_11], %10 {strides = array<i32>} : memref<8x128xf32, #tpu.memory_space<vmem>>, vector<8x128xf32>,
    return
  }
  func.func @transform_0(%arg0: i32) -> (i32, i32) {
    %c0_i32 = arith.constant 0 : i32
    %c0_i32_0 = arith.constant 0 : i32
    return %arg0, %c0_i32 : i32, i32
  }
  func.func @transform_1(%arg0: i32) -> (i32, i32) {
    %c0_i32 = arith.constant 0 : i32
    %c0_i32_0 = arith.constant 0 : i32
    %c0_i32_1 = arith.constant 0 : i32
    return %c0_i32, %c0_i32_0 : i32, i32
  }
  func.func @transform_2(%arg0: i32) -> (i32, i32) {
    %c0_i32 = arith.constant 0 : i32
    %c0_i32_0 = arith.constant 0 : i32
    %c0_i32_1 = arith.constant 0 : i32
    return %c0_i32, %c0_i32_0 : i32, i32
  }
  func.func @transform_3(%arg0: i32) -> (i32, i32) {
    %c0_i32 = arith.constant 0 : i32
    %c0_i32_0 = arith.constant 0 : i32
    %c0_i32_1 = arith.constant 0 : i32
    return %c0_i32, %c0_i32_0 : i32, i32
  }
  func.func @transform_4(%arg0: i32) -> (i32, i32) {
    %c0_i32 = arith.constant 0 : i32
    %c0_i32_0 = arith.constant 0 : i32
    %c0_i32_1 = arith.constant 0 : i32
    return %c0_i32, %c0_i32_0 : i32, i32
  }
  func.func @transform_5(%arg0: i32) -> (i32, i32) {
    %c0_i32 = arith.constant 0 : i32
    %c0_i32_0 = arith.constant 0 : i32
    return %arg0, %c0_i32 : i32, i32
  }
}

</mosaic_0001>

<bundles_post_ra>
// kernel: tpu_custom_call.1
= control target key start
LH: loop header
LB: loop body
LE: loop exit
PB: predicated region body
PF: predicated region fallthrough
CT: control target
= control target key end

     0   :  { %10 = vsyncpa [#allocation3], 0  ;;  %s636_s0 = inlined_call_operand.hbm [shape: f32[8,256], index: 0, kind: input, shape index: {}]   ;;  %s637_s1 = inlined_call_operand.hbm [shape: f32[256,128], index: 1, kind: input, shape index: {}]   ;;  %s638_s2 = inlined_call_operand.vmem [shape: f32[1,128], index: 2, kind: input, shape index: {}]   ;;  %s639_s3 = inlined_call_operand.hbm [shape: f32[128,128], index: 3, kind: input, shape index: {}]   ;;  %s640_s4 = inlined_call_operand.vmem [shape: f32[1,128], index: 4, kind: input, shape index: {}]   ;;  %s641_s5 = inlined_call_operand.hbm [shape: f32[8,128], index: 5, kind: output, shape index: {}]  }
   0x1   :  { %11 = vsyncpa [#allocation6], 0 }
   0x2   :  { %12 = vsyncpa [#allocation4], 0  ;;  %s529_s18 = smov [#allocation5]   ;;  %s435_s22 = scalar_lea.hbm %s637_s1, 4096 }
   0x3   :  { %s28_s19 = sshll.u32 %s529_s18, 4  ;;  %p436_p0 = scmp.ne.s32.totalorder %s637_s1, %s435_s22  ;;  %s29_s19 = int_to_ptr.vmem [resolvable:$true] %s28_s19 }
   0x4   :  { %p439_p1 = scmp.lt.u32.totalorder %s435_s22, %s637_s1 }
   0x6   :  { %p441_p2 = pnand %p439_p1, %p436_p0 }
   0x8   :  { %444 = shalt.err (!%p441_p2)
}
   0x9   :  { %s445_s27 = scalar_lea.vmem %s29_s19, 4096  ;;  %p450_p4 = scmp.lt.s32.totalorder %s29_s19, %s29_s19 }
   0xa   :  { %p446_p3 = scmp.ne.s32.totalorder %s29_s19, %s445_s27  ;;  %p451_p5 = scmp.lt.s32.totalorder %s445_s27, %s445_s27 }
   0xc   :  { %p452_p6 = por %p451_p5, %p450_p4 }
   0xe   :  { %p453_p7 = pnand %p452_p6, %p446_p3 }
  0x10   :  { %456 = shalt.err (!%p453_p7)
}
  0x11   :  { %s530_s28 = smov 128   ;;  %s531_s29 = smov 8  }
  0x12   :  { %34 = dma.hbm_to_vmem [thread:$0]  %s637_s1, 4096, %s29_s19, [#allocation6], %s530_s28, %s530_s28, %s531_s29  }
  0x13   :  { %s532_s7 = smov [#allocation2]   ;;  %s533_s9 = smov [#allocation7]  }
  0x14   :  { %s19_s8 = sshll.u32 %s532_s7, 4  ;;  %s42_s10 = sshll.u32 %s533_s9, 4  ;;  %s20_s8 = int_to_ptr.vmem [resolvable:$true] %s19_s8  ;;  %s43_s10 = int_to_ptr.vmem [resolvable:$true] %s42_s10 }
  0x15   :  { %s457_s13 = scalar_lea.hbm %s636_s0, 256 }
  0x16   :  { %p458_p8 = scmp.ne.s32.totalorder %s636_s0, %s457_s13  ;;  %p461_p9 = scmp.lt.u32.totalorder %s457_s13, %s636_s0 }
  0x18   :  { %p463_p10 = pnand %p461_p9, %p458_p8 }
  0x1a   :  { %466 = shalt.err (!%p463_p10)
}
  0x1b   :  { %s467_s1 = scalar_lea.vmem %s20_s8, 256  ;;  %p472_p12 = scmp.lt.s32.totalorder %s20_s8, %s20_s8 }
  0x1c   :  { %p468_p11 = scmp.ne.s32.totalorder %s20_s8, %s467_s1  ;;  %p473_p13 = scmp.lt.s32.totalorder %s467_s1, %s467_s1 }
  0x1e   :  { %p474_p0 = por %p473_p13, %p472_p12 }
  0x20   :  { %p475_p1 = pnand %p474_p0, %p468_p11 }
  0x22   :  { %478 = shalt.err (!%p475_p1)
}
  0x23   :  { %22 = dma.hbm_to_vmem [thread:$0]  %s636_s0, 256, %s20_s8, [#allocation3]  }
  0x24   :  { %s479_s22 = scalar_lea.hbm %s639_s3, 2048 }
  0x25   :  { %p480_p2 = scmp.ne.s32.totalorder %s639_s3, %s479_s22  ;;  %p483_p3 = scmp.lt.u32.totalorder %s479_s22, %s639_s3 }
  0x27   :  { %p485_p4 = pnand %p483_p3, %p480_p2 }
  0x29   :  { %488 = shalt.err (!%p485_p4)
}
  0x2a   :  { %s489_s27 = scalar_lea.vmem %s43_s10, 2048  ;;  %p494_p6 = scmp.lt.s32.totalorder %s43_s10, %s43_s10 }
  0x2b   :  { %p490_p5 = scmp.ne.s32.totalorder %s43_s10, %s489_s27  ;;  %p495_p7 = scmp.lt.s32.totalorder %s489_s27, %s489_s27 }
  0x2d   :  { %p496_p8 = por %p495_p7, %p494_p6 }
  0x2f   :  { %p497_p9 = pnand %p496_p8, %p490_p5 }
  0x31   :  { %500 = shalt.err (!%p497_p9)
}
  0x32   :  { %48 = dma.hbm_to_vmem [thread:$0]  %s639_s3, 2048, %s43_s10, [#allocation6], %s530_s28, %s530_s28, %s531_s29  }
  0x33   :  { %523 = dma.done.wait [#allocation3], 256  }
  0x34   :  { %524 = vsyncadd [#allocation3], 4294967040 }
  0x35   :  { %525 = dma.done.wait [#allocation6], 6144  }
  0x36   :  { %526 = vsyncadd [#allocation6], 4294961152  ;;  %v534_v0 = vmov 0.0|0.0   ;;  %v78_v1 = vld [vmem:[#allocation5 + $0x80] sm:$0xff]  ;;  %v79_v2 = vld [vmem:[#allocation5 + $0x88] sm:$0xff]  ;;  %vm535_vm0 = vmmov 0  }
  0x37   :  { %402 = vmatprep.subr.bf16.mxu1 %v534_v0  ;;  %v62_v3 = vld [vmem:[#allocation5] sm:$0xff]  ;;  %v370_v4 = vpack.c.bf16 %v79_v2, %v78_v1  ;;  %v63_v5 = vld [vmem:[#allocation5 + $0x8] sm:$0xff]  ;;  %v80_v6 = vld [vmem:[#allocation5 + $0x90] sm:$0xff]  ;;  %s537_s7 = smov [#allocation8]  }
  0x38   :  { %v81_v7 = vld [vmem:[#allocation5 + $0x98] sm:$0xff]  ;;  %v372_v8 = vpack.c.bf16 %v63_v5, %v62_v3  ;;  %v64_v10 = vld [vmem:[#allocation5 + $0x10] sm:$0xff]  ;;  %v82_v12 = vld [vmem:[#allocation5 + $0xa0] sm:$0xff]  ;;  %s271_s8 = sshll.u32 %s537_s7, 4  ;;  %s272_s8 = int_to_ptr.vmem [resolvable:$true] %s271_s8 }
  0x39   :  { %v374_v9 = vpack.c.bf16 %v81_v7, %v80_v6  ;;  %v65_v11 = vld [vmem:[#allocation5 + $0x18] sm:$0xff]  ;;  %371 = vmatprep.subr.bf16.mxu0 %v370_v4  ;;  %v83_v13 = vld [vmem:[#allocation5 + $0xa8] sm:$0xff]  ;;  %v66_v16 = vld [vmem:[#allocation5 + $0x20] sm:$0xff]  ;;  %s501_s9 = scalar_lea.vmem %s272_s8, 128  ;;  %p506_p11 = scmp.lt.s32.totalorder %s272_s8, %s272_s8 }
  0x3a   :  { %373 = vmatpush3.bf16.msra.mxu0 %v372_v8  ;;  %v376_v14 = vpack.c.bf16 %v65_v11, %v64_v10  ;;  %v378_v15 = vpack.c.bf16 %v83_v13, %v82_v12  ;;  %v67_v17 = vld [vmem:[#allocation5 + $0x28] sm:$0xff]  ;;  %v84_v18 = vld [vmem:[#allocation5 + $0xb0] sm:$0xff]  ;;  %v85_v19 = vld [vmem:[#allocation5 + $0xb8] sm:$0xff]  ;;  %v536_v12 = vmov 0.0   ;;  %p502_p10 = scmp.ne.s32.totalorder %s272_s8, %s501_s9  ;;  %p507_p12 = scmp.lt.s32.totalorder %s501_s9, %s501_s9 }
  0x3b   :  { %375 = vmatprep.subr.bf16.mxu0 %v374_v9  ;;  %v380_v20 = vpack.c.bf16 %v67_v17, %v66_v16  ;;  %v382_v21 = vpack.c.bf16 %v85_v19, %v84_v18  ;;  %v68_v22 = vld [vmem:[#allocation5 + $0x30] sm:$0xff]  ;;  %v69_v23 = vld [vmem:[#allocation5 + $0x38] sm:$0xff]  ;;  %v86_v24 = vld [vmem:[#allocation5 + $0xc0] sm:$0xff]  ;;  %367 = vmatprep.mubr.msk.f32.mxu1 %vm535_vm0, %v536_v12 }
  0x3c   :  { %v87_v25 = vld [vmem:[#allocation5 + $0xc8] sm:$0xff]  ;;  %v61_v26 = vld [vmem:[#allocation2 + $0x8] sm:$0xff]  ;;  %v171_v27 = vld [vmem:[#allocation7] sm:$0xff]  ;;  %v384_v29 = vpack.c.bf16 %v69_v23, %v68_v22  ;;  %p508_p13 = por %p507_p12, %p506_p11 }
  0x3d   :  { %165 = vmatprep.mubr.f32.mxu0 %v61_v26  ;;  %v172_v28 = vld [vmem:[#allocation7 + $0x8] sm:$0xff]  ;;  %v173_v31 = vld [vmem:[#allocation7 + $0x10] sm:$0xff]  ;;  %v174_v32 = vld [vmem:[#allocation7 + $0x18] sm:$0xff]  ;;  %v386_v33 = vpack.c.bf16 %v87_v25, %v86_v24 }
  0x3e   :  { %377 = vmatpush3.bf16.msra.mxu0 %v376_v14  ;;  %v403_v30 = vpack.c.bf16 %v172_v28, %v171_v27  ;;  %v70_v34 = vld [vmem:[#allocation5 + $0x40] sm:$0xff]  ;;  %v71_v35 = vld [vmem:[#allocation5 + $0x48] sm:$0xff]  ;;  %v88_v36 = vld [vmem:[#allocation5 + $0xd0] sm:$0xff]  ;;  %v406_v38 = vpack.c.bf16 %v174_v32, %v173_v31  ;;  %p509_p0 = pnand %p508_p13, %p502_p10 }
  0x3f   :  { %379 = vmatprep.subr.bf16.mxu0 %v378_v15  ;;  %v89_v37 = vld [vmem:[#allocation5 + $0xd8] sm:$0xff]  ;;  %v175_v39 = vld [vmem:[#allocation7 + $0x20] sm:$0xff]  ;;  %v176_v40 = vld [vmem:[#allocation7 + $0x28] sm:$0xff]  ;;  %v388_v41 = vpack.c.bf16 %v71_v35, %v70_v34 }
  0x40   :  { %404 = vmatpush3.bf16.msra.mxu1 %v403_v30  ;;  %v390_v42 = vpack.c.bf16 %v89_v37, %v88_v36  ;;  %v72_v43 = vld [vmem:[#allocation5 + $0x50] sm:$0xff]  ;;  %v73_v44 = vld [vmem:[#allocation5 + $0x58] sm:$0xff]  ;;  %v90_v45 = vld [vmem:[#allocation5 + $0xe0] sm:$0xff]  ;;  %v409_v47 = vpack.c.bf16 %v176_v40, %v175_v39 }
  0x41   :  { %405 = vmatprep.subr.bf16.mxu1 %v534_v0  ;;  %v91_v46 = vld [vmem:[#allocation5 + $0xe8] sm:$0xff]  ;;  %v177_v48 = vld [vmem:[#allocation7 + $0x30] sm:$0xff]  ;;  %v178_v49 = vld [vmem:[#allocation7 + $0x38] sm:$0xff]  ;;  %v392_v50 = vpack.c.bf16 %v73_v44, %v72_v43 }
  0x42   :  { %381 = vmatpush3.bf16.msra.mxu0 %v380_v20  ;;  %v394_v51 = vpack.c.bf16 %v91_v46, %v90_v45  ;;  %v74_v52 = vld [vmem:[#allocation5 + $0x60] sm:$0xff]  ;;  %v75_v53 = vld [vmem:[#allocation5 + $0x68] sm:$0xff]  ;;  %v92_v54 = vld [vmem:[#allocation5 + $0xf0] sm:$0xff]  ;;  %v412_v56 = vpack.c.bf16 %v178_v49, %v177_v48 }
  0x43   :  { %383 = vmatprep.subr.bf16.mxu0 %v382_v21  ;;  %v93_v55 = vld [vmem:[#allocation5 + $0xf8] sm:$0xff]  ;;  %v179_v57 = vld [vmem:[#allocation7 + $0x40] sm:$0xff]  ;;  %v180_v58 = vld [vmem:[#allocation7 + $0x48] sm:$0xff]  ;;  %v396_v59 = vpack.c.bf16 %v75_v53, %v74_v52 }
  0x44   :  { %407 = vmatpush3.bf16.msra.mxu1 %v406_v38  ;;  %v398_v60 = vpack.c.bf16 %v93_v55, %v92_v54  ;;  %v76_v61 = vld [vmem:[#allocation5 + $0x70] sm:$0xff]  ;;  %v77_v62 = vld [vmem:[#allocation5 + $0x78] sm:$0xff]  ;;  %v415_v63 = vpack.c.bf16 %v180_v58, %v179_v57  ;;  %v183_v5 = vld [vmem:[#allocation7 + $0x60] sm:$0xff] }
  0x45   :  { %408 = vmatprep.subr.bf16.mxu1 %v534_v0  ;;  %v181_v1 = vld [vmem:[#allocation7 + $0x50] sm:$0xff]  ;;  %v182_v2 = vld [vmem:[#allocation7 + $0x58] sm:$0xff]  ;;  %v400_v3 = vpack.c.bf16 %v77_v62, %v76_v61  ;;  %v184_v6 = vld [vmem:[#allocation7 + $0x68] sm:$0xff] }
  0x46   :  { %385 = vmatpush3.bf16.msra.mxu0 %v384_v29  ;;  %v418_v4 = vpack.c.bf16 %v182_v2, %v181_v1  ;;  %v60_v7 = vld [vmem:[#allocation2] sm:$0xff]  ;;  %v421_v8 = vpack.c.bf16 %v184_v6, %v183_v5  ;;  %v186_v10 = vld [vmem:[#allocation7 + $0x78] sm:$0xff] }
  0x47   :  { %387 = vmatprep.subr.bf16.mxu0 %v386_v33  ;;  %v185_v9 = vld [vmem:[#allocation7 + $0x70] sm:$0xff] }
  0x48   :  { %410 = vmatpush3.bf16.msra.mxu1 %v409_v47  ;;  %v424_v11 = vpack.c.bf16 %v186_v10, %v185_v9  ;;  %v281_v14 = vld [vmem:[%s638_s2] ss:$0 sm:$0xff] }
  0x49   :  { %411 = vmatprep.subr.bf16.mxu1 %v534_v0 }
  0x4a   :  { %389 = vmatpush3.bf16.msra.mxu0 %v388_v41 }
  0x4b   :  { %391 = vmatprep.subr.bf16.mxu0 %v390_v42 }
  0x4c   :  { %413 = vmatpush3.bf16.msra.mxu1 %v412_v56 }
  0x4d   :  { %414 = vmatprep.subr.bf16.mxu1 %v534_v0 }
  0x4e   :  { %393 = vmatpush3.bf16.msra.mxu0 %v392_v50 }
  0x4f   :  { %395 = vmatprep.subr.bf16.mxu0 %v394_v51 }
  0x50   :  { %416 = vmatpush3.bf16.msra.mxu1 %v415_v63 }
  0x51   :  { %417 = vmatprep.subr.bf16.mxu1 %v534_v0 }
  0x52   :  { %397 = vmatpush3.bf16.msra.mxu0 %v396_v59 }
  0x53   :  { %399 = vmatprep.subr.bf16.mxu0 %v398_v60 }
  0x54   :  { %419 = vmatpush3.bf16.msra.mxu1 %v418_v4 }
  0x55   :  { %420 = vmatprep.subr.bf16.mxu1 %v534_v0 }
  0x56   :  { %401 = vmatpush3.bf16.msra.mxu0 %v400_v3 }
  0x58   :  { %422 = vmatpush3.bf16.msra.mxu1 %v421_v8 }
  0x59   :  { %166 = vmatmul.mubr.f32.vlgmr.msra.gmra.mrb[0].mxu0 %v60_v7  ;;  %423 = vmatprep.subr.bf16.mxu1 %v534_v0  ;;  %v282_v0 = vld [vmem:[%s640_s4] ss:$0 sm:$0xff] }
  0x5c   :  { %425 = vmatpush3.bf16.msra.mxu1 %v424_v11 }
 0x12c   :  { %v315_v13 = vpop.f32.mrb[0].mxu0 }
 0x12d   :  { %v316_v15 = vpop.f32.mrb[1].mxu0 }
 0x12e   :  { %v317_v16 = vadd.f32 %v316_v15, %v315_v13 }
 0x130   :  { %v168_v17 = vadd.f32 %v317_v16, %v281_v14 }
 0x132   :  { %368 = vmatmul.mubr.f32.vlgmr.msra.gmra.mrb[0].mxu1 %v168_v17 }
 0x205   :  { %v260_v18 = vpop.f32.mrb[0].mxu1 }
 0x206   :  { %v261_v19 = vadd.f32 %v282_v0, %v260_v18  ;;  %v369_v20 = vpop.f32.mrb[1].mxu1 }
 0x208   :  { %264 = vst [vmem:[#allocation8] sm:$0xff] %v261_v19 }
 0x209   :  { %512 = shalt.err (!%p509_p0)
}
 0x20a   :  { %s513_s11 = scalar_lea.hbm %s641_s5, 128 }
 0x20b   :  { %p514_p1 = scmp.ne.s32.totalorder %s641_s5, %s513_s11  ;;  %p517_p2 = scmp.lt.u32.totalorder %s513_s11, %s641_s5 }
 0x20d   :  { %p519_p3 = pnand %p517_p2, %p514_p1 }
 0x20f   :  { %522 = shalt.err (!%p519_p3)
}
 0x210   :  { %274 = dma.vmem_to_hbm [thread:$0]  %s272_s8, 128, %s641_s5, [#allocation4]  }
 0x211   :  { %527 = dma.done.wait [#allocation4], 128  }
 0x212   :  { %528 = vsyncadd [#allocation4], 4294967168 }
 0x213   :  { %278 = vsyncpa [#allocation3], 1 }
 0x214   :  { %279 = vsyncpa [#allocation6], 1 }
 0x215   :  { %280 = vsyncpa [#allocation4], 1 }

</bundles_post_ra>
